<compile_context>
chip_gen: v7x
topology: tpu7x:2x2x1
jax: 0.10.0
libtpu: 0.0.40
codegen_flags: <defaults>
</compile_context>

<pallas_src>
import jax
import jax.numpy as jnp
from jax import lax
from jax.experimental import pallas as pl
from jax.experimental.pallas import tpu as pltpu


# ------------------------------ helpers ------------------------------------

def _round_up(x, m):
    return ((x + m - 1) // m) * m


def _block_diag2(a, b):
    za = jnp.zeros((a.shape[0], b.shape[1]), a.dtype)
    zb = jnp.zeros((b.shape[0], a.shape[1]), b.dtype)
    top = jnp.concatenate([a, za], axis=1)
    bot = jnp.concatenate([zb, b], axis=1)
    return jnp.concatenate([top, bot], axis=0)


_TILE_M = 512          # 512-row tiles: measured HBM-roofline sweet spot on v5e/v6e
_TILE_K_CANDS = (2048, 1536, 1024)
_VMEM_LIMIT = 48 * 1024 * 1024   # portable: below v7x's 64 MiB physical VMEM


def _choose_tiles(n, tile_m=None, tile_k=None):
    """Pick (n_pad, tile_m, tile_k). bf16-friendly: everything a multiple of 128."""
    if tile_m is not None and tile_k is not None:
        n_pad = _round_up(n, max(tile_m, tile_k))
        return n_pad, tile_m, tile_k
    if n <= _TILE_M:                      # single block
        n_pad = _round_up(n, 128)
        return n_pad, n_pad, n_pad
    n_pad = _round_up(n, _TILE_M)
    tk = _TILE_M
    for cand in _TILE_K_CANDS:
        if n_pad % cand == 0:
            tk = cand
            break
    return n_pad, _TILE_M, tk


# ----------------------------- Pallas kernels ------------------------------

def _layer1_kernel(a_ref, abt_ref, y_ref, w2s_ref, w2t_ref, b2_ref, z_ref,
                   acc_s, acc_t):
    """K-tiled layer-1 propagation + ReLU + lane-placed layer-2 linear epilogue."""
    k = pl.program_id(1)

    @pl.when(k == 0)
    def _():
        acc_s[...] = jnp.zeros_like(acc_s)
        acc_t[...] = jnp.zeros_like(acc_t)

    y = y_ref[...]                                     # (tile_k, y_w) bf16, [Ys | Yt]
    # Source encoders' conv1 propagates with the forward adjacency.
    acc_s[...] += jnp.dot(a_ref[...], y, preferred_element_type=jnp.float32)
    # Target encoders' conv1 propagates with the backward adjacency: contract the
    # sublane dim of the column block abT[k, i]  ->  A_bwd[i, k] @ Y[k]  (no A^T array).
    acc_t[...] += lax.dot_general(abt_ref[...], y, (((0,), (0,)), ((), ())),
                                  preferred_element_type=jnp.float32)

    @pl.when(k == pl.num_programs(1) - 1)
    def _():
        hs = jnp.maximum(acc_s[...], 0.0).astype(jnp.bfloat16)
        ht = jnp.maximum(acc_t[...], 0.0).astype(jnp.bfloat16)
        # Lane-placed (y_w, z_w) weights: unused lanes hit zero weight rows, output slab
        # is fully lane-dense -> no in-kernel concatenation, unmasked 128-wide store.
        z = jnp.dot(hs, w2s_ref[...], preferred_element_type=jnp.float32)
        z = z + jnp.dot(ht, w2t_ref[...], preferred_element_type=jnp.float32)
        z = z + b2_ref[...]
        z_ref[...] = z.astype(z_ref.dtype)


def _make_layer2_kernel(out_c, out_w, divider, training):
    """K-tiled layer-2 propagation + fused reparametrization epilogue."""
    inv = 1.0 / float(divider)
    opad = out_w - 2 * out_c

    def kernel(abt_ref, a_ref, z_ref, ns_ref, nt_ref, o_ref, acc_s, acc_t):
        k = pl.program_id(1)

        @pl.when(k == 0)
        def _():
            acc_s[...] = jnp.zeros_like(acc_s)
            acc_t[...] = jnp.zeros_like(acc_t)

        z = z_ref[...]                                 # (tile_k, z_w) bf16 full 128-lane slab
        # Source encoders' conv4 propagates with the backward adjacency (transposed-LHS dot).
        acc_s[...] += lax.dot_general(abt_ref[...], z, (((0,), (0,)), ((), ())),
                                      preferred_element_type=jnp.float32)
        # Target encoders' conv4 propagates with the forward adjacency.
        acc_t[...] += jnp.dot(a_ref[...], z, preferred_element_type=jnp.float32)

        @pl.when(k == pl.num_programs(1) - 1)
        def _():
            os_ = acc_s[...]                           # useful lanes [0 : 2*out_c]
            ot_ = acc_t[...]                           # useful lanes [2*out_c : 4*out_c]
            # Small once-per-output-tile lane selects on the f32 results (never MXU RHS).
            s_mu, s_ls = os_[:, :out_c], os_[:, out_c:2 * out_c]
            t_mu, t_ls = ot_[:, 2 * out_c:3 * out_c], ot_[:, 3 * out_c:4 * out_c]
            if training:
                s_out = s_mu + ns_ref[...] * jnp.exp(s_ls) * inv
                t_out = t_mu + nt_ref[...] * jnp.exp(t_ls) * inv
            else:
                s_out, t_out = s_mu, t_mu
            parts = [s_out, t_out]
            if opad > 0:
                parts.append(jnp.zeros((s_out.shape[0], opad), jnp.float32))
            o_ref[...] = jnp.concatenate(parts, axis=1).astype(o_ref.dtype)

    return kernel


# ----------------------------- pallas_call wrappers -------------------------

def fused_layer1(a_fwd, abT, y, w2s, w2t, b2, *, tile_m, tile_k, z_w):
    n_pad = a_fwd.shape[0]
    y_w = y.shape[1]
    grid = (n_pad // tile_m, n_pad // tile_k)

    a_spec = pl.BlockSpec((tile_m, tile_k), lambda i, k: (i, k))
    abt_spec = pl.BlockSpec((tile_k, tile_m), lambda i, k: (k, i))
    y_spec = pl.BlockSpec((tile_k, y_w), lambda i, k: (k, 0))
    w_spec = pl.BlockSpec((y_w, z_w), lambda i, k: (0, 0))
    b_spec = pl.BlockSpec((1, z_w), lambda i, k: (0, 0))

    flops = 4 * n_pad * n_pad * y_w + 4 * n_pad * y_w * z_w
    bytes_acc = (2 * 2 * n_pad * n_pad                 # both adjacency streams, bf16
                 + 2 * (n_pad // tile_m) * n_pad * y_w  # Y re-read per row tile
                 + 2 * n_pad * z_w)

    return pl.pallas_call(
        _layer1_kernel,
        out_shape=jax.ShapeDtypeStruct((n_pad, z_w), jnp.bfloat16),
        grid=grid,
        in_specs=[a_spec, abt_spec, y_spec, w_spec, w_spec, b_spec],
        out_specs=pl.BlockSpec((tile_m, z_w), lambda i, k: (i, 0)),
        scratch_shapes=[pltpu.VMEM((tile_m, y_w), jnp.float32),
                        pltpu.VMEM((tile_m, y_w), jnp.float32)],
        compiler_params=pltpu.CompilerParams(
            dimension_semantics=("parallel", "arbitrary"),
            vmem_limit_bytes=_VMEM_LIMIT),
        cost_estimate=pl.CostEstimate(flops=flops, transcendentals=0,
                                      bytes_accessed=bytes_acc),
    )(a_fwd, abT, y, w2s, w2t, b2)


def fused_layer2(abT, a_fwd, z, ns, nt, *, tile_m, tile_k, out_c, out_w,
                 divider=5.0, training=True):
    n_pad = a_fwd.shape[0]
    z_w = z.shape[1]
    grid = (n_pad // tile_m, n_pad // tile_k)

    a_spec = pl.BlockSpec((tile_m, tile_k), lambda i, k: (i, k))
    abt_spec = pl.BlockSpec((tile_k, tile_m), lambda i, k: (k, i))
    z_spec = pl.BlockSpec((tile_k, z_w), lambda i, k: (k, 0))
    noise_spec = pl.BlockSpec((tile_m, out_c), lambda i, k: (i, 0))

    flops = 4 * n_pad * n_pad * z_w
    transc = (2 * n_pad * out_c) if training else 0
    bytes_acc = (2 * 2 * n_pad * n_pad
                 + 2 * (n_pad // tile_m) * n_pad * z_w
                 + 4 * n_pad * out_w + 8 * n_pad * out_c)

    return pl.pallas_call(
        _make_layer2_kernel(out_c, out_w, divider, training),
        out_shape=jax.ShapeDtypeStruct((n_pad, out_w), jnp.float32),
        grid=grid,
        in_specs=[abt_spec, a_spec, z_spec, noise_spec, noise_spec],
        out_specs=pl.BlockSpec((tile_m, out_w), lambda i, k: (i, 0)),
        scratch_shapes=[pltpu.VMEM((tile_m, z_w), jnp.float32),
                        pltpu.VMEM((tile_m, z_w), jnp.float32)],
        compiler_params=pltpu.CompilerParams(
            dimension_semantics=("parallel", "arbitrary"),
            vmem_limit_bytes=_VMEM_LIMIT),
        cost_estimate=pl.CostEstimate(flops=flops, transcendentals=transc,
                                      bytes_accessed=bytes_acc),
    )(abT, a_fwd, z, ns, nt)


# ------------------------------- JAX glue ----------------------------------

def build_norm_adj(edge_index, num_nodes, alpha=0.5, beta=0.5, self_loops=True,
                   swap_exponents=False):
    """Dense normalized adjacency A with out = A @ x, matching DirectedGCNConv.propagate.

    With swap_exponents=True this returns (A_backward)^T directly — the adjacency the
    module uses on flipped edge_index — scattered at the same positions as A_forward,
    so when alpha == beta it is literally equal to A_forward (no transpose needed)."""
    row, col = edge_index[0], edge_index[1]
    if self_loops:
        sl = jnp.arange(num_nodes, dtype=edge_index.dtype)
        row = jnp.concatenate([row, sl])
        col = jnp.concatenate([col, sl])
    ones = jnp.ones(row.shape[0], dtype=jnp.float32)
    in_deg = jnp.zeros(num_nodes, jnp.float32).at[col].add(ones)
    out_deg = jnp.zeros(num_nodes, jnp.float32).at[row].add(ones)
    if swap_exponents:
        norm = (out_deg[row] ** (-alpha)) * (in_deg[col] ** (-beta))
    else:
        norm = (in_deg[col] ** (-alpha)) * (out_deg[row] ** (-beta))
    # scatter-add build stays in XLA (no clean Pallas scatter equivalent)
    return jnp.zeros((num_nodes, num_nodes), jnp.float32).at[col, row].add(norm)


def init_linear(key, in_c, out_c):
    """torch.nn.Linear-style uniform init; weight stored as (in, out)."""
    kw, kb = jax.random.split(key)
    bound = 1.0 / (in_c ** 0.5)
    w = jax.random.uniform(kw, (in_c, out_c), jnp.float32, -bound, bound)
    b = jax.random.uniform(kb, (1, out_c), jnp.float32, -bound, bound)
    return w, b


def directed_edge_encoder_forward(params, s, t, edge_index, key,
                                  alpha=0.5, beta=0.5, self_loops=True,
                                  training=True, divider=5.0,
                                  tile_m=None, tile_k=None):
    n, _ = s.shape
    hid = params["source_mu"][0].shape[1]
    out_c = params["source_mu"][2].shape[1]

    n_pad, tile_m, tile_k = _choose_tiles(n, tile_m, tile_k)
    pad = n_pad - n

    # Normalized adjacencies. abT satisfies abT^T == A_backward; when alpha == beta it IS
    # a_fwd, so no second N^2 array (and no transpose pass) is ever materialized.
    a_fwd = jnp.pad(build_norm_adj(edge_index, n, alpha, beta, self_loops),
                    ((0, pad), (0, pad))).astype(jnp.bfloat16)
    if alpha == beta:
        abT = a_fwd
    else:
        abT = jnp.pad(build_norm_adj(edge_index, n, alpha, beta, self_loops,
                                     swap_exponents=True),
                      ((0, pad), (0, pad))).astype(jnp.bfloat16)

    # Precompute Y = [ s@W1(mu_s)+b | s@W1(ls_s)+b | t@W1(mu_t)+b | t@W1(ls_t)+b ]  (tiny, XLA).
    w1s = jnp.concatenate([params["source_mu"][0], params["source_logstd"][0]], axis=1)
    b1s = jnp.concatenate([params["source_mu"][1], params["source_logstd"][1]], axis=1)
    w1t = jnp.concatenate([params["target_mu"][0], params["target_logstd"][0]], axis=1)
    b1t = jnp.concatenate([params["target_mu"][1], params["target_logstd"][1]], axis=1)
    y_raw = jnp.concatenate([s @ w1s + b1s, t @ w1t + b1t], axis=1)      # (n, 4*hid) f32
    y_w = _round_up(4 * hid, 128)
    y = jnp.pad(y_raw, ((0, pad), (0, y_w - 4 * hid))).astype(jnp.bfloat16)

    z_w = _round_up(4 * out_c, 128)
    out_w = _round_up(2 * out_c, 128)

    # Lane/sublane-placed layer-2 weights: rows follow Y's lane layout, cols follow z's.
    w2s_blk = _block_diag2(params["source_mu"][2], params["source_logstd"][2])  # (2h, 2o)
    w2t_blk = _block_diag2(params["target_mu"][2], params["target_logstd"][2])
    w2s = jnp.pad(w2s_blk, ((0, y_w - 2 * hid), (0, z_w - 2 * out_c))).astype(jnp.bfloat16)
    w2t = jnp.pad(w2t_blk, ((2 * hid, y_w - 4 * hid),
                            (2 * out_c, z_w - 4 * out_c))).astype(jnp.bfloat16)
    b2 = jnp.concatenate([params["source_mu"][3], params["source_logstd"][3],
                          params["target_mu"][3], params["target_logstd"][3]], axis=1)
    b2 = jnp.pad(b2, ((0, 0), (0, z_w - 4 * out_c)))                     # (1, z_w) f32

    # Kernel 1: layer-1 propagation (K-tiled) + all per-node linears -> pre-propagation z.
    z = fused_layer1(a_fwd, abT, y, w2s, w2t, b2,
                     tile_m=tile_m, tile_k=tile_k, z_w=z_w)

    # Reparametrization noise.
    # TODO(synk): generate in-kernel via pltpu.prng_seed/stateful_normal to drop these streams.
    k1, k2 = jax.random.split(key)
    ns = jnp.pad(jax.random.normal(k1, (n, out_c), jnp.float32), ((0, pad), (0, 0)))
    nt = jnp.pad(jax.random.normal(k2, (n, out_c), jnp.float32), ((0, pad), (0, 0)))

    # Kernel 2: layer-2 propagation (K-tiled) + fused reparametrization.
    out = fused_layer2(abT, a_fwd, z, ns, nt, tile_m=tile_m, tile_k=tile_k,
                       out_c=out_c, out_w=out_w, divider=divider, training=training)

    return out[:n, :out_c], out[:n, out_c:2 * out_c]


def reference_forward(params, s, t, edge_index, alpha=0.5, beta=0.5, self_loops=True):
    """Pure-XLA f32 dense reference (eval mode: returns the mu outputs)."""
    n = s.shape[0]
    a_fwd = build_norm_adj(edge_index, n, alpha, beta, self_loops)
    abT = a_fwd if alpha == beta else build_norm_adj(edge_index, n, alpha, beta,
                                                     self_loops, swap_exponents=True)
    a_bwd = abT.T

    def enc(x, a1, a2, p):
        w1, b1, w2, b2 = p
        h = jax.nn.relu(a1 @ (x @ w1 + b1))
        return a2 @ (h @ w2 + b2)

    s_mu = enc(s, a_fwd, a_bwd, params["source_mu"])
    t_mu = enc(t, a_bwd, a_fwd, params["target_mu"])
    return s_mu, t_mu


# --------------------------------- main -------------------------------------

if __name__ == "__main__":
    in_c, hid_c, out_c = 4, 32, 16    # in_channels, hidden_channels, out_channels

    def make_case(key, n, e):
        ks = jax.random.split(key, 8)
        s = jax.random.normal(ks[0], (n, in_c), jnp.float32)
        t = jax.random.normal(ks[1], (n, in_c), jnp.float32)
        edge_index = jax.random.randint(ks[2], (2, e), 0, n, jnp.int32)
        params = {}
        for i, name in enumerate(["source_mu", "source_logstd",
                                  "target_mu", "target_logstd"]):
            k1, k2 = jax.random.split(ks[3 + i])
            w1, b1 = init_linear(k1, in_c, hid_c)
            w2, b2 = init_linear(k2, hid_c, out_c)
            params[name] = (w1, b1, w2, b2)
        return params, s, t, edge_index, ks[7]

    def rel_err(a, b):
        return float(jnp.max(jnp.abs(a - b)) / (jnp.max(jnp.abs(b)) + 1e-6))

    # Small case (single-tile grid), training path.
    params, s, t, ei, nkey = make_case(jax.random.PRNGKey(0), 8, 12)
    s_out, t_out = directed_edge_encoder_forward(params, s, t, ei, nkey, training=True)
    jax.block_until_ready((s_out, t_out))
    assert s_out.shape == (8, out_c) and t_out.shape == (8, out_c)
    assert bool(jnp.all(jnp.isfinite(s_out))) and bool(jnp.all(jnp.isfinite(t_out)))

    # Eval-mode numerical check vs the pure-XLA dense reference (bf16 vs f32 tolerance).
    s_mu, t_mu = directed_edge_encoder_forward(params, s, t, ei, nkey, training=False)
    s_ref, t_ref = reference_forward(params, s, t, ei)
    assert rel_err(s_mu, s_ref) < 0.05 and rel_err(t_mu, t_ref) < 0.05

    # Slightly larger case exercising the full (rows, K) accumulation grid (3 x 3 blocks).
    params2, s2, t2, ei2, nkey2 = make_case(jax.random.PRNGKey(1), 300, 900)
    s2_mu, t2_mu = directed_edge_encoder_forward(params2, s2, t2, ei2, nkey2,
                                                 training=False, tile_m=128, tile_k=128)
    jax.block_until_ready((s2_mu, t2_mu))
    s2_ref, t2_ref = reference_forward(params2, s2, t2, ei2)
    assert rel_err(s2_mu, s2_ref) < 0.05 and rel_err(t2_mu, t2_ref) < 0.05

    print("KERNEL_OK")
</pallas_src>

<mosaic_0001>
module attributes {stable_mosaic.version = 11 : i64} {
  func.func @_layer1_kernel(%arg0: i32, %arg1: i32, %arg2: memref<128x128xbf16, #tpu.memory_space<vmem>>, %arg3: memref<128x128xbf16, #tpu.memory_space<vmem>>, %arg4: memref<128x128xbf16, #tpu.memory_space<vmem>>, %arg5: memref<128x128xbf16, #tpu.memory_space<vmem>>, %arg6: memref<128x128xbf16, #tpu.memory_space<vmem>>, %arg7: memref<1x128xf32, #tpu.memory_space<vmem>>, %arg8: memref<128x128xbf16, #tpu.memory_space<vmem>>, %arg9: memref<128x128xf32, #tpu.memory_space<vmem>>, %arg10: memref<128x128xf32, #tpu.memory_space<vmem>>) attributes {dimension_semantics = [#tpu.dimension_semantics<parallel>, #tpu.dimension_semantics<arbitrary>], iteration_bounds = array<i64: 1, 1>, scalar_prefetch = 0 : i64, scratch_operands = 2 : i64, tpu.core_type = #tpu.core_type<tc>, window_params = [{transform_indices = @transform_0, window_bounds = array<i64: 128, 128>}, {transform_indices = @transform_1, window_bounds = array<i64: 128, 128>}, {transform_indices = @transform_2, window_bounds = array<i64: 128, 128>}, {pipeline_mode = #tpu.pipeline_mode<synchronous>, transform_indices = @transform_3, window_bounds = array<i64: 128, 128>}, {pipeline_mode = #tpu.pipeline_mode<synchronous>, transform_indices = @transform_4, window_bounds = array<i64: 128, 128>}, {pipeline_mode = #tpu.pipeline_mode<synchronous>, transform_indices = @transform_5, window_bounds = array<i64: 1, 128>}, {transform_indices = @transform_6, window_bounds = array<i64: 128, 128>}]} {
    %c0_i32 = arith.constant 0 : i32
    %0 = arith.cmpi eq, %arg1, %c0_i32 : i32
    %1 = arith.extui %0 : i1 to i32
    %c0_i32_0 = arith.constant 0 : i32
    %2 = arith.cmpi ne, %1, %c0_i32_0 : i32
    scf.if %2 {
      %cst_17 = arith.constant 0.000000e+00 : f32
      %17 = vector.broadcast %cst_17 : f32 to vector<128x128xf32>
      %c0_18 = arith.constant 0 : index
      %c0_19 = arith.constant 0 : index
      %18 = vector.load %arg9[%c0_18, %c0_19] : memref<128x128xf32, #tpu.memory_space<vmem>>, vector<128x128xf32>
      tpu.vector_store %arg9[%c0_18, %c0_19], %17 {strides = array<i32>} : memref<128x128xf32, #tpu.memory_space<vmem>>, vector<128x128xf32>,
      %cst_20 = arith.constant 0.000000e+00 : f32
      %19 = vector.broadcast %cst_20 : f32 to vector<128x128xf32>
      %c0_21 = arith.constant 0 : index
      %c0_22 = arith.constant 0 : index
      %20 = vector.load %arg10[%c0_21, %c0_22] : memref<128x128xf32, #tpu.memory_space<vmem>>, vector<128x128xf32>
      tpu.vector_store %arg10[%c0_21, %c0_22], %19 {strides = array<i32>} : memref<128x128xf32, #tpu.memory_space<vmem>>, vector<128x128xf32>,
    } else {
    }
    %c0 = arith.constant 0 : index
    %c0_1 = arith.constant 0 : index
    %3 = vector.load %arg4[%c0, %c0_1] : memref<128x128xbf16, #tpu.memory_space<vmem>>, vector<128x128xbf16>
    %c0_2 = arith.constant 0 : index
    %c0_3 = arith.constant 0 : index
    %4 = vector.load %arg9[%c0_2, %c0_3] : memref<128x128xf32, #tpu.memory_space<vmem>>, vector<128x128xf32>
    %c0_4 = arith.constant 0 : index
    %c0_5 = arith.constant 0 : index
    %5 = vector.load %arg2[%c0_4, %c0_5] : memref<128x128xbf16, #tpu.memory_space<vmem>>, vector<128x128xbf16>
    %cst = arith.constant dense<0.000000e+00> : vector<128x128xf32>
    %6 = tpu.matmul %5, %3, %cst {dimension_numbers = #tpu.dot_dimension_numbers<[1], [0], [0], [1], [0, 0, 1, 1], [], []>} : vector<128x128xbf16>, vector<128x128xbf16>, vector<128x128xf32> -> vector<128x128xf32>
    %7 = arith.addf %4, %6 : vector<128x128xf32>
    %c0_6 = arith.constant 0 : index
    %c0_7 = arith.constant 0 : index
    %8 = vector.load %arg9[%c0_6, %c0_7] : memref<128x128xf32, #tpu.memory_space<vmem>>, vector<128x128xf32>
    tpu.vector_store %arg9[%c0_6, %c0_7], %7 {strides = array<i32>} : memref<128x128xf32, #tpu.memory_space<vmem>>, vector<128x128xf32>,
    %c0_8 = arith.constant 0 : index
    %c0_9 = arith.constant 0 : index
    %9 = vector.load %arg10[%c0_8, %c0_9] : memref<128x128xf32, #tpu.memory_space<vmem>>, vector<128x128xf32>
    %c0_10 = arith.constant 0 : index
    %c0_11 = arith.constant 0 : index
    %10 = vector.load %arg3[%c0_10, %c0_11] : memref<128x128xbf16, #tpu.memory_space<vmem>>, vector<128x128xbf16>
    %cst_12 = arith.constant dense<0.000000e+00> : vector<128x128xf32>
    %11 = tpu.matmul %10, %3, %cst_12 {dimension_numbers = #tpu.dot_dimension_numbers<[0], [0], [1], [1], [0, 1, 1, 1], [], []>} : vector<128x128xbf16>, vector<128x128xbf16>, vector<128x128xf32> -> vector<128x128xf32>
    %12 = arith.addf %9, %11 : vector<128x128xf32>
    %c0_13 = arith.constant 0 : index
    %c0_14 = arith.constant 0 : index
    %13 = vector.load %arg10[%c0_13, %c0_14] : memref<128x128xf32, #tpu.memory_space<vmem>>, vector<128x128xf32>
    tpu.vector_store %arg10[%c0_13, %c0_14], %12 {strides = array<i32>} : memref<128x128xf32, #tpu.memory_space<vmem>>, vector<128x128xf32>,
    %c0_i32_15 = arith.constant 0 : i32
    %14 = arith.cmpi eq, %arg1, %c0_i32_15 : i32
    %15 = arith.extui %14 : i1 to i32
    %c0_i32_16 = arith.constant 0 : i32
    %16 = arith.cmpi ne, %15, %c0_i32_16 : i32
    scf.if %16 {
      %c0_17 = arith.constant 0 : index
      %c0_18 = arith.constant 0 : index
      %17 = vector.load %arg9[%c0_17, %c0_18] : memref<128x128xf32, #tpu.memory_space<vmem>>, vector<128x128xf32>
      %cst_19 = arith.constant 0.000000e+00 : f32
      %18 = vector.broadcast %cst_19 : f32 to vector<128x128xf32>
      %19 = arith.maximumf %17, %18 : vector<128x128xf32>
      %20 = arith.truncf %19 : vector<128x128xf32> to vector<128x128xbf16>
      %c0_20 = arith.constant 0 : index
      %c0_21 = arith.constant 0 : index
      %21 = vector.load %arg10[%c0_20, %c0_21] : memref<128x128xf32, #tpu.memory_space<vmem>>, vector<128x128xf32>
      %cst_22 = arith.constant 0.000000e+00 : f32
      %22 = vector.broadcast %cst_22 : f32 to vector<128x128xf32>
      %23 = arith.maximumf %21, %22 : vector<128x128xf32>
      %24 = arith.truncf %23 : vector<128x128xf32> to vector<128x128xbf16>
      %c0_23 = arith.constant 0 : index
      %c0_24 = arith.constant 0 : index
      %25 = vector.load %arg5[%c0_23, %c0_24] : memref<128x128xbf16, #tpu.memory_space<vmem>>, vector<128x128xbf16>
      %cst_25 = arith.constant dense<0.000000e+00> : vector<128x128xf32>
      %26 = tpu.matmul %20, %25, %cst_25 {dimension_numbers = #tpu.dot_dimension_numbers<[1], [0], [0], [1], [0, 0, 1, 1], [], []>} : vector<128x128xbf16>, vector<128x128xbf16>, vector<128x128xf32> -> vector<128x128xf32>
      %c0_26 = arith.constant 0 : index
      %c0_27 = arith.constant 0 : index
      %27 = vector.load %arg6[%c0_26, %c0_27] : memref<128x128xbf16, #tpu.memory_space<vmem>>, vector<128x128xbf16>
      %cst_28 = arith.constant dense<0.000000e+00> : vector<128x128xf32>
      %28 = tpu.matmul %24, %27, %cst_28 {dimension_numbers = #tpu.dot_dimension_numbers<[1], [0], [0], [1], [0, 0, 1, 1], [], []>} : vector<128x128xbf16>, vector<128x128xbf16>, vector<128x128xf32> -> vector<128x128xf32>
      %29 = arith.addf %26, %28 : vector<128x128xf32>
      %c0_29 = arith.constant 0 : index
      %c0_30 = arith.constant 0 : index
      %30 = vector.load %arg7[%c0_29, %c0_30] : memref<1x128xf32, #tpu.memory_space<vmem>>, vector<1x128xf32>
      %31 = vector.broadcast %30 : vector<1x128xf32> to vector<128x128xf32>
      %32 = arith.addf %29, %31 : vector<128x128xf32>
      %33 = arith.truncf %32 : vector<128x128xf32> to vector<128x128xbf16>
      %c0_31 = arith.constant 0 : index
      %c0_32 = arith.constant 0 : index
      %34 = vector.load %arg8[%c0_31, %c0_32] : memref<128x128xbf16, #tpu.memory_space<vmem>>, vector<128x128xbf16>
      tpu.vector_store %arg8[%c0_31, %c0_32], %33 {strides = array<i32>} : memref<128x128xbf16, #tpu.memory_space<vmem>>, vector<128x128xbf16>,
    } else {
    }
    return
  }
  func.func @transform_0(%arg0: i32, %arg1: i32) -> (i32, i32) {
    %c0_i32 = arith.constant 0 : i32
    return %arg0, %arg1 : i32, i32
  }
  func.func @transform_1(%arg0: i32, %arg1: i32) -> (i32, i32) {
    %c0_i32 = arith.constant 0 : i32
    return %arg1, %arg0 : i32, i32
  }
  func.func @transform_2(%arg0: i32, %arg1: i32) -> (i32, i32) {
    %c0_i32 = arith.constant 0 : i32
    %c0_i32_0 = arith.constant 0 : i32
    return %arg1, %c0_i32 : i32, i32
  }
  func.func @transform_3(%arg0: i32, %arg1: i32) -> (i32, i32) {
    %c0_i32 = arith.constant 0 : i32
    %c0_i32_0 = arith.constant 0 : i32
    %c0_i32_1 = arith.constant 0 : i32
    return %c0_i32, %c0_i32_0 : i32, i32
  }
  func.func @transform_4(%arg0: i32, %arg1: i32) -> (i32, i32) {
    %c0_i32 = arith.constant 0 : i32
    %c0_i32_0 = arith.constant 0 : i32
    %c0_i32_1 = arith.constant 0 : i32
    return %c0_i32, %c0_i32_0 : i32, i32
  }
  func.func @transform_5(%arg0: i32, %arg1: i32) -> (i32, i32) {
    %c0_i32 = arith.constant 0 : i32
    %c0_i32_0 = arith.constant 0 : i32
    %c0_i32_1 = arith.constant 0 : i32
    return %c0_i32, %c0_i32_0 : i32, i32
  }
  func.func @transform_6(%arg0: i32, %arg1: i32) -> (i32, i32) {
    %c0_i32 = arith.constant 0 : i32
    %c0_i32_0 = arith.constant 0 : i32
    return %arg0, %c0_i32 : i32, i32
  }
}

</mosaic_0001>

<bundles_post_ra>
// kernel: tpu_custom_call.1
= control target key start
LH: loop header
LB: loop body
LE: loop exit
PB: predicated region body
PF: predicated region fallthrough
CT: control target
= control target key end

     0   :  { %11 = vsyncpa [#allocation5], 0  ;;  %s1844_s0 = inlined_call_operand.hbm [shape: bf16[128,128], index: 0, kind: input, shape index: {}]   ;;  %s1845_s1 = inlined_call_operand.hbm [shape: bf16[128,128], index: 1, kind: input, shape index: {}]   ;;  %s1846_s2 = inlined_call_operand.hbm [shape: bf16[128,128], index: 2, kind: input, shape index: {}]   ;;  %s1847_s3 = inlined_call_operand.hbm [shape: bf16[128,128], index: 3, kind: input, shape index: {}]   ;;  %s1848_s4 = inlined_call_operand.hbm [shape: bf16[128,128], index: 4, kind: input, shape index: {}]   ;;  %s1849_s5 = inlined_call_operand.vmem [shape: f32[1,128], index: 5, kind: input, shape index: {}]   ;;  %s1850_s6 = inlined_call_operand.hbm [shape: bf16[128,128], index: 6, kind: output, shape index: {}]  }
   0x1   :  { %12 = vsyncpa [#allocation8], 0 }
   0x2   :  { %13 = vsyncpa [#allocation11], 0 }
   0x3   :  { %14 = vsyncpa [#allocation6], 0  ;;  %s1670_s21 = smov [#allocation7]   ;;  %s1671_s23 = smov [#allocation10]  }
   0x4   :  { %s32_s22 = sshll.u32 %s1670_s21, 4  ;;  %s56_s24 = sshll.u32 %s1671_s23, 4  ;;  %s33_s22 = int_to_ptr.vmem [resolvable:$true] %s32_s22  ;;  %s1713_s24 = int_to_ptr.vmem [resolvable:$true] %s56_s24 }
   0x5   :  { %s1530_s27 = scalar_lea.hbm %s1845_s1, 1024 }
   0x6   :  { %p1531_p0 = scmp.ne.s32.totalorder %s1845_s1, %s1530_s27  ;;  %p1534_p1 = scmp.lt.u32.totalorder %s1530_s27, %s1845_s1 }
   0x8   :  { %p1536_p2 = pnand %p1534_p1, %p1531_p0 }
   0xa   :  { %1539 = shalt.err (!%p1536_p2)
}
   0xb   :  { %s1540_s8 = scalar_lea.vmem %s33_s22, 1024  ;;  %p1545_p4 = scmp.lt.s32.totalorder %s33_s22, %s33_s22 }
   0xc   :  { %p1541_p3 = scmp.ne.s32.totalorder %s33_s22, %s1540_s8  ;;  %p1546_p5 = scmp.lt.s32.totalorder %s1540_s8, %s1540_s8 }
   0xe   :  { %p1547_p6 = por %p1546_p5, %p1545_p4 }
  0x10   :  { %p1548_p7 = pnand %p1547_p6, %p1541_p3 }
  0x12   :  { %1551 = shalt.err (!%p1548_p7)
}
  0x13   :  { %s1672_s9 = smov 64   ;;  %s1673_s10 = smov 4  }
  0x14   :  { %38 = dma.hbm_to_vmem [thread:$0]  %s1845_s1, 1024, %s33_s22, [#allocation8], %s1672_s9, %s1672_s9, %s1673_s10  }
  0x15   :  { %s1552_s15 = scalar_lea.hbm %s1847_s3, 1024 }
  0x16   :  { %p1553_p8 = scmp.ne.s32.totalorder %s1847_s3, %s1552_s15  ;;  %p1556_p9 = scmp.lt.u32.totalorder %s1552_s15, %s1847_s3 }
  0x18   :  { %p1558_p10 = pnand %p1556_p9, %p1553_p8 }
  0x1a   :  { %1561 = shalt.err (!%p1558_p10)
}
  0x1b   :  { %s1562_s20 = scalar_lea.vmem %s1713_s24, 1024  ;;  %p1567_p12 = scmp.lt.s32.totalorder %s1713_s24, %s1713_s24 }
  0x1c   :  { %p1563_p11 = scmp.ne.s32.totalorder %s1713_s24, %s1562_s20  ;;  %p1568_p13 = scmp.lt.s32.totalorder %s1562_s20, %s1562_s20 }
  0x1e   :  { %p1569_p0 = por %p1568_p13, %p1567_p12 }
  0x20   :  { %p1570_p1 = pnand %p1569_p0, %p1563_p11 }
  0x22   :  { %1573 = shalt.err (!%p1570_p1)
}
  0x23   :  { %62 = dma.hbm_to_vmem [thread:$0]  %s1847_s3, 1024, %s1713_s24, [#allocation11], %s1672_s9, %s1672_s9, %s1673_s10  }
  0x24   :  { %s1674_s22 = smov [#allocation4]   ;;  %s1675_s25 = smov [#allocation9]  }
  0x25   :  { %s20_s23 = sshll.u32 %s1674_s22, 4  ;;  %s44_s26 = sshll.u32 %s1675_s25, 4  ;;  %s21_s23 = int_to_ptr.vmem [resolvable:$true] %s20_s23  ;;  %s1750_s26 = int_to_ptr.vmem [resolvable:$true] %s44_s26 }
  0x26   :  { %s1574_s29 = scalar_lea.hbm %s1844_s0, 1024 }
  0x27   :  { %p1575_p2 = scmp.ne.s32.totalorder %s1844_s0, %s1574_s29  ;;  %p1578_p3 = scmp.lt.u32.totalorder %s1574_s29, %s1844_s0 }
  0x29   :  { %p1580_p4 = pnand %p1578_p3, %p1575_p2 }
  0x2b   :  { %1583 = shalt.err (!%p1580_p4)
}
  0x2c   :  { %s1584_s3 = scalar_lea.vmem %s21_s23, 1024  ;;  %p1589_p6 = scmp.lt.s32.totalorder %s21_s23, %s21_s23 }
  0x2d   :  { %p1585_p5 = scmp.ne.s32.totalorder %s21_s23, %s1584_s3  ;;  %p1590_p7 = scmp.lt.s32.totalorder %s1584_s3, %s1584_s3 }
  0x2f   :  { %p1591_p8 = por %p1590_p7, %p1589_p6 }
  0x31   :  { %p1592_p9 = pnand %p1591_p8, %p1585_p5 }
  0x33   :  { %1595 = shalt.err (!%p1592_p9)
}
  0x34   :  { %26 = dma.hbm_to_vmem [thread:$0]  %s1844_s0, 1024, %s21_s23, [#allocation5], %s1672_s9, %s1672_s9, %s1673_s10  }
  0x35   :  { %s1596_s15 = scalar_lea.hbm %s1846_s2, 1024 }
  0x36   :  { %p1597_p10 = scmp.ne.s32.totalorder %s1846_s2, %s1596_s15  ;;  %p1600_p11 = scmp.lt.u32.totalorder %s1596_s15, %s1846_s2 }
  0x38   :  { %p1602_p12 = pnand %p1600_p11, %p1597_p10 }
  0x3a   :  { %1605 = shalt.err (!%p1602_p12)
}
  0x3b   :  { %s1606_s20 = scalar_lea.vmem %s1750_s26, 1024  ;;  %p1611_p0 = scmp.lt.s32.totalorder %s1750_s26, %s1750_s26 }
  0x3c   :  { %p1607_p13 = scmp.ne.s32.totalorder %s1750_s26, %s1606_s20  ;;  %p1612_p1 = scmp.lt.s32.totalorder %s1606_s20, %s1606_s20 }
  0x3e   :  { %p1613_p2 = por %p1612_p1, %p1611_p0 }
  0x40   :  { %p1614_p3 = pnand %p1613_p2, %p1607_p13 }
  0x42   :  { %1617 = shalt.err (!%p1614_p3)
}
  0x43   :  { %50 = dma.hbm_to_vmem [thread:$0]  %s1846_s2, 1024, %s1750_s26, [#allocation8], %s1672_s9, %s1672_s9, %s1673_s10  }
  0x44   :  { %s1676_s21 = smov [#allocation12]   ;;  %s1618_s27 = scalar_lea.hbm %s1848_s4, 1024 }
  0x45   :  { %s68_s22 = sshll.u32 %s1676_s21, 4  ;;  %p1619_p4 = scmp.ne.s32.totalorder %s1848_s4, %s1618_s27  ;;  %s69_s22 = int_to_ptr.vmem [resolvable:$true] %s68_s22 }
  0x46   :  { %p1622_p5 = scmp.lt.u32.totalorder %s1618_s27, %s1848_s4 }
  0x48   :  { %p1624_p6 = pnand %p1622_p5, %p1619_p4 }
  0x4a   :  { %1627 = shalt.err (!%p1624_p6)
}
  0x4b   :  { %s1628_s8 = scalar_lea.vmem %s69_s22, 1024  ;;  %p1633_p8 = scmp.lt.s32.totalorder %s69_s22, %s69_s22 }
  0x4c   :  { %p1629_p7 = scmp.ne.s32.totalorder %s69_s22, %s1628_s8  ;;  %p1634_p9 = scmp.lt.s32.totalorder %s1628_s8, %s1628_s8 }
  0x4e   :  { %p1635_p10 = por %p1634_p9, %p1633_p8 }
  0x50   :  { %p1636_p11 = pnand %p1635_p10, %p1629_p7 }
  0x52   :  { %1639 = shalt.err (!%p1636_p11)
}
  0x53   :  { %74 = dma.hbm_to_vmem [thread:$0]  %s1848_s4, 1024, %s69_s22, [#allocation11], %s1672_s9, %s1672_s9, %s1673_s10  }
  0x54   :  { %1662 = dma.done.wait [#allocation5], 1024  }
  0x55   :  { %1663 = vsyncadd [#allocation5], 4294966272 }
  0x56   :  { %1664 = dma.done.wait [#allocation8], 2048  }
  0x57   :  { %1665 = vsyncadd [#allocation8], 4294965248 }
  0x58   :  { %1666 = dma.done.wait [#allocation11], 2048  }
  0x59   :  { %1667 = vsyncadd [#allocation11], 4294965248  ;;  %v1490_v0 = vld [vmem:[#allocation7] sm:$0xff]   ;;  %v1491_v1 = vld [vmem:[#allocation7 + $0x8] sm:$0xff]  }
  0x5a   :  { %482 = vxpose.xlu0.c.b16.start [1/8] %v1490_v0, 128  ;;  %v1492_v2 = vld [vmem:[#allocation7 + $0x10] sm:$0xff]   ;;  %v1498_v3 = vld [vmem:[#allocation9] sm:$0xff]   ;;  %v1499_v4 = vld [vmem:[#allocation9 + $0x8] sm:$0xff]  }
  0x5b   :  { %v1493_v5 = vld [vmem:[#allocation7 + $0x18] sm:$0xff]   ;;  %1338 = vmatprep.subr.bf16.mxu1 %v1498_v3  ;;  %v1500_v6 = vld [vmem:[#allocation9 + $0x10] sm:$0xff]   ;;  %v1494_v7 = vld [vmem:[#allocation7 + $0x20] sm:$0xff]  }
  0x5c   :  { %1339 = vmatpush3.bf16.msra.mxu1 %v1498_v3  ;;  %v1501_v8 = vld [vmem:[#allocation9 + $0x18] sm:$0xff]   ;;  %v1506_v9 = vld [vmem:[#allocation4] sm:$0xff]   ;;  %v1495_v10 = vld [vmem:[#allocation7 + $0x28] sm:$0xff]  }
  0x5d   :  { %1340 = vmatprep.subr.bf16.mxu1 %v1499_v4  ;;  %1354 = vmatprep.mubr.bf16.mxu1 %v1506_v9  ;;  %v1502_v11 = vld [vmem:[#allocation9 + $0x20] sm:$0xff]   ;;  %v1496_v12 = vld [vmem:[#allocation7 + $0x30] sm:$0xff]   ;;  %v1503_v13 = vld [vmem:[#allocation9 + $0x28] sm:$0xff]  }
  0x5e   :  { %483 = vxpose.xlu0.c.b16.cont [2/8] %v1491_v1, 128  ;;  %v1497_v14 = vld [vmem:[#allocation7 + $0x38] sm:$0xff]   ;;  %v1504_v15 = vld [vmem:[#allocation9 + $0x30] sm:$0xff]   ;;  %v1507_v17 = vld [vmem:[#allocation4 + $0x8] sm:$0xff]  }
  0x5f   :  { %v1505_v16 = vld [vmem:[#allocation9 + $0x38] sm:$0xff]   ;;  %v1508_v18 = vld [vmem:[#allocation4 + $0x10] sm:$0xff]   ;;  %v1510_v20 = vld [vmem:[#allocation4 + $0x20] sm:$0xff]  }
  0x60   :  { %1341 = vmatpush3.bf16.msra.mxu1 %v1499_v4  ;;  %v1509_v19 = vld [vmem:[#allocation4 + $0x18] sm:$0xff]   ;;  %v1511_v21 = vld [vmem:[#allocation4 + $0x28] sm:$0xff]   ;;  %v1512_v22 = vld [vmem:[#allocation4 + $0x30] sm:$0xff]  }
  0x61   :  { %1342 = vmatprep.subr.bf16.mxu1 %v1500_v6  ;;  %v1513_v23 = vld [vmem:[#allocation4 + $0x38] sm:$0xff]   ;;  %v1514_v32 = vld [vmem:[#allocation12] sm:$0xff]   ;;  %v1515_v33 = vld [vmem:[#allocation12 + $0x8] sm:$0xff]  }
  0x62   :  { %484 = vxpose.xlu0.c.b16.cont [3/8] %v1492_v2, 128  ;;  %1402 = vmatprep.subr.bf16.mxu0 %v1514_v32  ;;  %v1516_v34 = vld [vmem:[#allocation12 + $0x10] sm:$0xff]   ;;  %v1517_v35 = vld [vmem:[#allocation12 + $0x18] sm:$0xff]   ;;  %v1518_v36 = vld [vmem:[#allocation12 + $0x20] sm:$0xff]  }
  0x63   :  { %1403 = vmatpush3.bf16.msra.mxu0 %v1514_v32  ;;  %v1519_v37 = vld [vmem:[#allocation12 + $0x28] sm:$0xff]   ;;  %v1520_v38 = vld [vmem:[#allocation12 + $0x30] sm:$0xff]   ;;  %v1521_v39 = vld [vmem:[#allocation12 + $0x38] sm:$0xff]  }
  0x64   :  { %1343 = vmatpush3.bf16.msra.mxu1 %v1500_v6  ;;  %1404 = vmatprep.subr.bf16.mxu0 %v1515_v33  ;;  %v1522_v40 = vld [vmem:[#allocation10] sm:$0xff]  }
  0x65   :  { %1344 = vmatprep.subr.bf16.mxu1 %v1501_v8 }
  0x66   :  { %485 = vxpose.xlu0.c.b16.cont [4/8] %v1493_v5, 128 }
  0x67   :  { %1405 = vmatpush3.bf16.msra.mxu0 %v1515_v33 }
  0x68   :  { %1345 = vmatpush3.bf16.msra.mxu1 %v1501_v8  ;;  %1406 = vmatprep.subr.bf16.mxu0 %v1516_v34 }
  0x69   :  { %1346 = vmatprep.subr.bf16.mxu1 %v1502_v11 }
  0x6a   :  { %486 = vxpose.xlu0.c.b16.cont [5/8] %v1494_v7, 128 }
  0x6b   :  { %1407 = vmatpush3.bf16.msra.mxu0 %v1516_v34  ;;  %v1524_v34 = vld [vmem:[#allocation10 + $0x10] sm:$0xff]  }
  0x6c   :  { %1347 = vmatpush3.bf16.msra.mxu1 %v1502_v11  ;;  %1408 = vmatprep.subr.bf16.mxu0 %v1517_v35 }
  0x6d   :  { %1348 = vmatprep.subr.bf16.mxu1 %v1503_v13 }
  0x6e   :  { %487 = vxpose.xlu0.c.b16.cont [6/8] %v1495_v10, 128 }
  0x6f   :  { %1409 = vmatpush3.bf16.msra.mxu0 %v1517_v35 }
  0x70   :  { %1349 = vmatpush3.bf16.msra.mxu1 %v1503_v13  ;;  %1410 = vmatprep.subr.bf16.mxu0 %v1518_v36 }
  0x71   :  { %1350 = vmatprep.subr.bf16.mxu1 %v1504_v15 }
  0x72   :  { %488 = vxpose.xlu0.c.b16.cont [7/8] %v1496_v12, 128 }
  0x73   :  { %1411 = vmatpush3.bf16.msra.mxu0 %v1518_v36 }
  0x74   :  { %1351 = vmatpush3.bf16.msra.mxu1 %v1504_v15  ;;  %1412 = vmatprep.subr.bf16.mxu0 %v1519_v37 }
  0x75   :  { %1352 = vmatprep.subr.bf16.mxu1 %v1505_v16 }
  0x76   :  { %489 = vxpose.xlu0.c.b16.end [8/8] %v1497_v14, 128 }
  0x77   :  { %1413 = vmatpush3.bf16.msra.mxu0 %v1519_v37 }
  0x78   :  { %1353 = vmatpush3.bf16.msra.mxu1 %v1505_v16  ;;  %1414 = vmatprep.subr.bf16.mxu0 %v1520_v38 }
  0x79   :  { %1370 = vmatprep.subr.bf16.mxu1 %v1498_v3 }
  0x7b   :  { %1355 = vmatmul.mubr.bf16.vlgmr.msra.gmra.mrb[0].mxu1 %v1507_v17  ;;  %1415 = vmatpush3.bf16.msra.mxu0 %v1520_v38 }
  0x7c   :  { %1371 = vmatpush3.bf16.msra.mxu1 %v1498_v3  ;;  %1358 = vmatprep.mubr.bf16.mxu1 %v1508_v18 }
  0x7d   :  { %1372 = vmatprep.subr.bf16.mxu1 %v1499_v4  ;;  %1416 = vmatprep.subr.bf16.mxu0 %v1521_v39 }
  0x7f   :  { %1417 = vmatpush3.bf16.msra.mxu0 %v1521_v39  ;;  %v1525_v39 = vld [vmem:[#allocation10 + $0x18] sm:$0xff]  }
  0x80   :  { %1373 = vmatpush3.bf16.msra.mxu1 %v1499_v4  ;;  %1434 = vmatprep.subr.bf16.mxu0 %v1522_v40 }
  0x81   :  { %1374 = vmatprep.subr.bf16.mxu1 %v1500_v6 }
  0x83   :  { %1359 = vmatmul.mubr.bf16.gmra.mrb[4].mxu1 %v1509_v19 }
  0x84   :  { %1375 = vmatpush3.bf16.msra.mxu1 %v1500_v6  ;;  %1362 = vmatprep.mubr.bf16.mxu1 %v1510_v20 }
  0x85   :  { %1376 = vmatprep.subr.bf16.mxu1 %v1501_v8 }
  0x88   :  { %1377 = vmatpush3.bf16.msra.mxu1 %v1501_v8 }
  0x89   :  { %1378 = vmatprep.subr.bf16.mxu1 %v1502_v11 }
  0x8b   :  { %1363 = vmatmul.mubr.bf16.gmra.mrb[8].mxu1 %v1511_v21 }
  0x8c   :  { %1379 = vmatpush3.bf16.msra.mxu1 %v1502_v11  ;;  %1366 = vmatprep.mubr.bf16.mxu1 %v1512_v22 }
  0x8d   :  { %1380 = vmatprep.subr.bf16.mxu1 %v1503_v13 }
  0x90   :  { %1381 = vmatpush3.bf16.msra.mxu1 %v1503_v13 }
  0x91   :  { %1382 = vmatprep.subr.bf16.mxu1 %v1504_v15 }
  0x93   :  { %1367 = vmatmul.mubr.bf16.gmra.mrb[12].mxu1 %v1513_v23 }
  0x94   :  { %1383 = vmatpush3.bf16.msra.mxu1 %v1504_v15 }
  0x95   :  { %1384 = vmatprep.subr.bf16.mxu1 %v1505_v16 }
  0x98   :  { %1385 = vmatpush3.bf16.msra.mxu1 %v1505_v16 }
  0xc0   :  { %v490_v24 = vpop.trf.xlu0 }
  0xc1   :  { %1386 = vmatprep.mubr.bf16.mxu1 %v490_v24 }
  0xc4   :  { %v491_v25 = vpop.trf.xlu0 }
  0xc5   :  { %1387 = vmatmul.mubr.bf16.vlgmr.msra.gmra.mrb[16].mxu1 %v491_v25 }
  0xc8   :  { %v492_v26 = vpop.trf.xlu0 }
  0xc9   :  { %1390 = vmatprep.mubr.bf16.mxu1 %v492_v26 }
  0xcc   :  { %v493_v27 = vpop.trf.xlu0 }
  0xcd   :  { %1391 = vmatmul.mubr.bf16.gmra.mrb[20].mxu1 %v493_v27  ;;  %v1523_v27 = vld [vmem:[#allocation10 + $0x8] sm:$0xff]  }
  0xd0   :  { %v494_v28 = vpop.trf.xlu0 }
  0xd1   :  { %1394 = vmatprep.mubr.bf16.mxu1 %v494_v28 }
  0xd4   :  { %v495_v29 = vpop.trf.xlu0 }
  0xd5   :  { %1395 = vmatmul.mubr.bf16.gmra.mrb[24].mxu1 %v495_v29 }
  0xd8   :  { %v496_v30 = vpop.trf.xlu0 }
  0xd9   :  { %1398 = vmatprep.mubr.bf16.mxu1 %v496_v30 }
  0xdc   :  { %v497_v31 = vpop.trf.xlu0 }
  0xdd   :  { %1399 = vmatmul.mubr.bf16.gmra.mrb[28].mxu1 %v497_v31 }
 0x14e   :  { %v1356_v41 = vpop.f32.mrb[0].mxu1 }
 0x14f   :  { %v648_v42 = vmax.f32 %v1356_v41, 0.0  ;;  %v307_v43 = vpop.f32.mrb[1].mxu1 }
 0x150   :  { %v646_v44 = vmax.f32 %v307_v43, 0.0  ;;  %v1357_v45 = vpop.f32.mrb[2].mxu1 }
 0x151   :  { %v649_v46 = vmax.f32 %v1357_v45, 0.0  ;;  %v310_v47 = vpop.f32.mrb[3].mxu1 }
 0x152   :  { %v647_v48 = vmax.f32 %v310_v47, 0.0 }
 0x153   :  { %v1802_v49 = vpack.c.bf16 %v649_v46, %v648_v42  ;;  %v1526_v46 = vld [vmem:[#allocation10 + $0x20] sm:$0xff]  }
 0x154   :  { %v1804_v50 = vpack.c.bf16 %v647_v48, %v646_v44 }
 0x156   :  { %v1360_v51 = vpop.f32.mrb[4].mxu1 }
 0x157   :  { %v652_v52 = vmax.f32 %v1360_v51, 0.0  ;;  %v323_v53 = vpop.f32.mrb[5].mxu1 }
 0x158   :  { %v650_v54 = vmax.f32 %v323_v53, 0.0  ;;  %v1361_v55 = vpop.f32.mrb[6].mxu1  ;;  %v1527_v53 = vld [vmem:[#allocation10 + $0x28] sm:$0xff]  }
 0x159   :  { %v653_v56 = vmax.f32 %v1361_v55, 0.0  ;;  %v326_v57 = vpop.f32.mrb[7].mxu1 }
 0x15a   :  { %v651_v58 = vmax.f32 %v326_v57, 0.0 }
 0x15b   :  { %v1806_v59 = vpack.c.bf16 %v653_v56, %v652_v52 }
 0x15c   :  { %v1808_v60 = vpack.c.bf16 %v651_v58, %v650_v54 }
 0x15e   :  { %v1364_v61 = vpop.f32.mrb[8].mxu1 }
 0x15f   :  { %v656_v62 = vmax.f32 %v1364_v61, 0.0  ;;  %v339_v63 = vpop.f32.mrb[9].mxu1 }
 0x160   :  { %v654_v0 = vmax.f32 %v339_v63, 0.0  ;;  %v1365_v1 = vpop.f32.mrb[10].mxu1 }
 0x161   :  { %v657_v2 = vmax.f32 %v1365_v1, 0.0  ;;  %v342_v3 = vpop.f32.mrb[11].mxu1 }
 0x162   :  { %v655_v4 = vmax.f32 %v342_v3, 0.0  ;;  %v1529_v3 = vld [vmem:[#allocation10 + $0x38] sm:$0xff]  }
 0x163   :  { %v1810_v5 = vpack.c.bf16 %v657_v2, %v656_v62  ;;  %v1528_v62 = vld [vmem:[#allocation10 + $0x30] sm:$0xff]  }
 0x164   :  { %v1812_v6 = vpack.c.bf16 %v655_v4, %v654_v0 }
 0x166   :  { %v1368_v7 = vpop.f32.mrb[12].mxu1 }
 0x167   :  { %v660_v8 = vmax.f32 %v1368_v7, 0.0  ;;  %v355_v9 = vpop.f32.mrb[13].mxu1 }
 0x168   :  { %v658_v10 = vmax.f32 %v355_v9, 0.0  ;;  %v1369_v11 = vpop.f32.mrb[14].mxu1 }
 0x169   :  { %v661_v12 = vmax.f32 %v1369_v11, 0.0  ;;  %v358_v13 = vpop.f32.mrb[15].mxu1 }
 0x16a   :  { %v659_v14 = vmax.f32 %v358_v13, 0.0 }
 0x16b   :  { %v1814_v15 = vpack.c.bf16 %v661_v12, %v660_v8 }
 0x16c   :  { %v1816_v16 = vpack.c.bf16 %v659_v14, %v658_v10 }
 0x198   :  { %v1388_v17 = vpop.f32.mrb[16].mxu1 }
 0x199   :  { %v532_v18 = vpop.f32.mrb[17].mxu1  ;;  %v688_v20 = vmax.f32 %v1388_v17, 0.0 }
 0x19a   :  { %v1389_v19 = vpop.f32.mrb[18].mxu1  ;;  %v686_v23 = vmax.f32 %v532_v18, 0.0 }
 0x19b   :  { %v689_v21 = vmax.f32 %v1389_v19, 0.0  ;;  %v535_v22 = vpop.f32.mrb[19].mxu1 }
 0x19c   :  { %v687_v24 = vmax.f32 %v535_v22, 0.0 }
 0x19d   :  { %v703_v25 = vpack.c.bf16 %v689_v21, %v688_v20 }
 0x19e   :  { %v702_v26 = vpack.c.bf16 %v687_v24, %v686_v23 }
 0x1a0   :  { %v1392_v28 = vpop.f32.mrb[20].mxu1  ;;  %1418 = vmatprep.mubr.bf16.mxu0 %v702_v26 }
 0x1a1   :  { %v548_v29 = vpop.f32.mrb[21].mxu1  ;;  %1419 = vmatmul.mubr.bf16.vlgmr.msra.gmra.mrb[0].mxu0 %v703_v25  ;;  %v692_v31 = vmax.f32 %v1392_v28, 0.0 }
 0x1a2   :  { %1435 = vmatpush3.bf16.msra.mxu0 %v1522_v40  ;;  %v1393_v30 = vpop.f32.mrb[22].mxu1  ;;  %v690_v35 = vmax.f32 %v548_v29, 0.0 }
 0x1a3   :  { %v693_v32 = vmax.f32 %v1393_v30, 0.0  ;;  %v551_v33 = vpop.f32.mrb[23].mxu1  ;;  %1436 = vmatprep.subr.bf16.mxu0 %v1523_v27 }
 0x1a4   :  { %v691_v36 = vmax.f32 %v551_v33, 0.0 }
 0x1a5   :  { %v705_v37 = vpack.c.bf16 %v693_v32, %v692_v31 }
 0x1a6   :  { %v704_v38 = vpack.c.bf16 %v691_v36, %v690_v35  ;;  %1437 = vmatpush3.bf16.msra.mxu0 %v1523_v27 }
 0x1a7   :  { %1438 = vmatprep.subr.bf16.mxu0 %v1524_v34 }
 0x1a8   :  { %v1396_v41 = vpop.f32.mrb[24].mxu1  ;;  %1422 = vmatprep.mubr.bf16.mxu0 %v704_v38 }
 0x1a9   :  { %v564_v42 = vpop.f32.mrb[25].mxu1  ;;  %1423 = vmatmul.mubr.bf16.gmra.mrb[4].mxu0 %v705_v37  ;;  %v696_v40 = vmax.f32 %v1396_v41, 0.0 }
 0x1aa   :  { %1439 = vmatpush3.bf16.msra.mxu0 %v1524_v34  ;;  %v1397_v43 = vpop.f32.mrb[26].mxu1  ;;  %v694_v47 = vmax.f32 %v564_v42, 0.0 }
 0x1ab   :  { %v697_v44 = vmax.f32 %v1397_v43, 0.0  ;;  %v567_v45 = vpop.f32.mrb[27].mxu1  ;;  %1440 = vmatprep.subr.bf16.mxu0 %v1525_v39 }
 0x1ac   :  { %v695_v48 = vmax.f32 %v567_v45, 0.0 }
 0x1ad   :  { %v707_v51 = vpack.c.bf16 %v697_v44, %v696_v40 }
 0x1ae   :  { %v706_v52 = vpack.c.bf16 %v695_v48, %v694_v47  ;;  %1441 = vmatpush3.bf16.msra.mxu0 %v1525_v39 }
 0x1af   :  { %1442 = vmatprep.subr.bf16.mxu0 %v1526_v46 }
 0x1b0   :  { %v1400_v54 = vpop.f32.mrb[28].mxu1  ;;  %1426 = vmatprep.mubr.bf16.mxu0 %v706_v52 }
 0x1b1   :  { %v580_v55 = vpop.f32.mrb[29].mxu1  ;;  %1427 = vmatmul.mubr.bf16.gmra.mrb[8].mxu0 %v707_v51  ;;  %v700_v57 = vmax.f32 %v1400_v54, 0.0 }
 0x1b2   :  { %1443 = vmatpush3.bf16.msra.mxu0 %v1526_v46  ;;  %v1401_v56 = vpop.f32.mrb[30].mxu1  ;;  %v698_v63 = vmax.f32 %v580_v55, 0.0 }
 0x1b3   :  { %v701_v58 = vmax.f32 %v1401_v56, 0.0  ;;  %v583_v61 = vpop.f32.mrb[31].mxu1  ;;  %1444 = vmatprep.subr.bf16.mxu0 %v1527_v53 }
 0x1b4   :  { %v699_v0 = vmax.f32 %v583_v61, 0.0 }
 0x1b5   :  { %v709_v1 = vpack.c.bf16 %v701_v58, %v700_v57 }
 0x1b6   :  { %v708_v2 = vpack.c.bf16 %v699_v0, %v698_v63  ;;  %1445 = vmatpush3.bf16.msra.mxu0 %v1527_v53 }
 0x1b7   :  { %1446 = vmatprep.subr.bf16.mxu0 %v1528_v62 }
 0x1b8   :  { %1430 = vmatprep.mubr.bf16.mxu0 %v708_v2 }
 0x1b9   :  { %1431 = vmatmul.mubr.bf16.gmra.mrb[12].mxu0 %v709_v1 }
 0x1ba   :  { %1447 = vmatpush3.bf16.msra.mxu0 %v1528_v62  ;;  %1450 = vmatprep.mubr.bf16.mxu0 %v1804_v50  ;;  %v1194_v50 = vld [vmem:[%s1849_s5] ss:$0 sm:$0xff]  ;;  %s1677_s5 = smov [#allocation13]  }
 0x1bb   :  { %1448 = vmatprep.subr.bf16.mxu0 %v1529_v3  ;;  %s1140_s3 = sshll.u32 %s1677_s5, 4  ;;  %s1141_s3 = int_to_ptr.vmem [resolvable:$true] %s1140_s3 }
 0x1bc   :  { %s1640_s24 = scalar_lea.vmem %s1141_s3, 1024  ;;  %p1645_p13 = scmp.lt.s32.totalorder %s1141_s3, %s1141_s3 }
 0x1bd   :  { %p1641_p12 = scmp.ne.s32.totalorder %s1141_s3, %s1640_s24  ;;  %p1646_p0 = scmp.lt.s32.totalorder %s1640_s24, %s1640_s24 }
 0x1be   :  { %1449 = vmatpush3.bf16.msra.mxu0 %v1529_v3 }
 0x1bf   :  { %p1647_p1 = por %p1646_p0, %p1645_p13 }
 0x1c1   :  { %1451 = vmatmul.mubr.bf16.vlgmr.msra.gmra.mrb[0].mxu0 %v1802_v49  ;;  %p1648_p2 = pnand %p1647_p1, %p1641_p12 }
 0x1c2   :  { %1454 = vmatprep.mubr.bf16.mxu0 %v1808_v60 }
 0x1c9   :  { %1455 = vmatmul.mubr.bf16.gmra.mrb[4].mxu0 %v1806_v59 }
 0x1ca   :  { %1458 = vmatprep.mubr.bf16.mxu0 %v1812_v6 }
 0x1d1   :  { %1459 = vmatmul.mubr.bf16.gmra.mrb[8].mxu0 %v1810_v5 }
 0x1d2   :  { %1462 = vmatprep.mubr.bf16.mxu0 %v1816_v16 }
 0x1d9   :  { %1463 = vmatmul.mubr.bf16.gmra.mrb[12].mxu0 %v1814_v15 }
 0x294   :  { %v1452_v4 = vpop.f32.mrb[0].mxu0 }
 0x295   :  { %v969_v7 = vpop.f32.mrb[1].mxu0  ;;  %v1041_v49 = vadd.f32 %v1452_v4, %v1194_v50 }
 0x296   :  { %v1453_v8 = vpop.f32.mrb[2].mxu0  ;;  %v1039_v10 = vadd.f32 %v1194_v50, %v969_v7 }
 0x297   :  { %v1042_v9 = vadd.f32 %v1453_v8, %v1194_v50  ;;  %v972_v60 = vpop.f32.mrb[3].mxu0 }
 0x298   :  { %v1040_v59 = vadd.f32 %v1194_v50, %v972_v60 }
 0x299   :  { %v1235_v11 = vpack.c.bf16 %v1042_v9, %v1041_v49 }
 0x29a   :  { %v1230_v6 = vpack.c.bf16 %v1040_v59, %v1039_v10 }
 0x29b   :  { %1267 = vst [vmem:[#allocation13 + $0x8] sm:$0xff] %v1235_v11  }
 0x29c   :  { %1231 = vst [vmem:[#allocation13] sm:$0xff] %v1230_v6   ;;  %v1456_v5 = vpop.f32.mrb[4].mxu0 }
 0x29d   :  { %v985_v12 = vpop.f32.mrb[5].mxu0  ;;  %v1045_v14 = vadd.f32 %v1456_v5, %v1194_v50 }
 0x29e   :  { %v1457_v13 = vpop.f32.mrb[6].mxu0  ;;  %v1043_v17 = vadd.f32 %v1194_v50, %v985_v12 }
 0x29f   :  { %v1046_v15 = vadd.f32 %v1457_v13, %v1194_v50  ;;  %v988_v16 = vpop.f32.mrb[7].mxu0 }
 0x2a0   :  { %v1044_v18 = vadd.f32 %v1194_v50, %v988_v16 }
 0x2a1   :  { %v1245_v19 = vpack.c.bf16 %v1046_v15, %v1045_v14 }
 0x2a2   :  { %v1240_v20 = vpack.c.bf16 %v1044_v18, %v1043_v17 }
 0x2a3   :  { %1269 = vst [vmem:[#allocation13 + $0x18] sm:$0xff] %v1245_v19  }
 0x2a4   :  { %1268 = vst [vmem:[#allocation13 + $0x10] sm:$0xff] %v1240_v20   ;;  %v1460_v21 = vpop.f32.mrb[8].mxu0 }
 0x2a5   :  { %v1001_v22 = vpop.f32.mrb[9].mxu0  ;;  %v1049_v24 = vadd.f32 %v1460_v21, %v1194_v50 }
 0x2a6   :  { %v1461_v23 = vpop.f32.mrb[10].mxu0  ;;  %v1047_v27 = vadd.f32 %v1194_v50, %v1001_v22 }
 0x2a7   :  { %v1050_v25 = vadd.f32 %v1461_v23, %v1194_v50  ;;  %v1004_v26 = vpop.f32.mrb[11].mxu0 }
 0x2a8   :  { %v1048_v28 = vadd.f32 %v1194_v50, %v1004_v26 }
 0x2a9   :  { %v1255_v29 = vpack.c.bf16 %v1050_v25, %v1049_v24 }
 0x2aa   :  { %v1250_v30 = vpack.c.bf16 %v1048_v28, %v1047_v27 }
 0x2ab   :  { %1271 = vst [vmem:[#allocation13 + $0x28] sm:$0xff] %v1255_v29  }
 0x2ac   :  { %1270 = vst [vmem:[#allocation13 + $0x20] sm:$0xff] %v1250_v30   ;;  %v1464_v31 = vpop.f32.mrb[12].mxu0 }
 0x2ad   :  { %v1017_v32 = vpop.f32.mrb[13].mxu0  ;;  %v1053_v34 = vadd.f32 %v1464_v31, %v1194_v50 }
 0x2ae   :  { %v1465_v33 = vpop.f32.mrb[14].mxu0  ;;  %v1051_v37 = vadd.f32 %v1194_v50, %v1017_v32 }
 0x2af   :  { %v1054_v35 = vadd.f32 %v1465_v33, %v1194_v50  ;;  %v1020_v36 = vpop.f32.mrb[15].mxu0 }
 0x2b0   :  { %v1052_v38 = vadd.f32 %v1194_v50, %v1020_v36 }
 0x2b1   :  { %v1265_v39 = vpack.c.bf16 %v1054_v35, %v1053_v34 }
 0x2b2   :  { %v1260_v41 = vpack.c.bf16 %v1052_v38, %v1051_v37 }
 0x2b3   :  { %1273 = vst [vmem:[#allocation13 + $0x38] sm:$0xff] %v1265_v39  }
 0x2b4   :  { %1272 = vst [vmem:[#allocation13 + $0x30] sm:$0xff] %v1260_v41  }
 0x2b5   :  { %1651 = shalt.err (!%p1648_p2)
}
 0x2b6   :  { %s1652_s14 = scalar_lea.hbm %s1850_s6, 1024 }
 0x2b7   :  { %p1653_p3 = scmp.ne.s32.totalorder %s1850_s6, %s1652_s14  ;;  %p1656_p4 = scmp.lt.u32.totalorder %s1652_s14, %s1850_s6 }
 0x2b9   :  { %p1658_p5 = pnand %p1656_p4, %p1653_p3 }
 0x2bb   :  { %1661 = shalt.err (!%p1658_p5)
}
 0x2bc   :  { %1146 = dma.vmem_to_hbm [thread:$0]  %s1141_s3, 1024, %s1850_s6, [#allocation6], %s1672_s9, %s1672_s9, %s1673_s10  }
 0x2bd   :  { %1668 = dma.done.wait [#allocation6], 1024  }
 0x2be   :  { %1669 = vsyncadd [#allocation6], 4294966272 }
 0x2bf   :  { %1150 = vsyncpa [#allocation5], 1 }
 0x2c0   :  { %1151 = vsyncpa [#allocation8], 1 }
 0x2c1   :  { %1152 = vsyncpa [#allocation11], 1 }
 0x2c2   :  { %1153 = vsyncpa [#allocation6], 1 }

</bundles_post_ra>
